<compile_context>
chip_gen: v5e
topology: v5e:2x2
jax: 0.10.0
libtpu: 0.0.40
codegen_flags: <defaults>
</compile_context>

<pallas_src>
from functools import partial

import jax
import jax.numpy as jnp
from jax.experimental import pallas as pl
from jax.experimental.pallas import tpu as pltpu


# ----------------------------------------------------------------------------
# Pallas kernel: fused (rows x K) @ (K x cols) + bias, f32 accumulation
# ----------------------------------------------------------------------------
def _matmul_bias_kernel(x_ref, w_ref, b_ref, o_ref, *, compute_dtype):
    x = x_ref[...].astype(compute_dtype)
    w = w_ref[...].astype(compute_dtype)
    acc = jnp.dot(x, w, preferred_element_type=jnp.float32)
    o_ref[...] = (acc + b_ref[...].astype(jnp.float32)).astype(o_ref.dtype)


def _round_up(x, m):
    return ((x + m - 1) // m) * m


def _pick_row_tile(M, tm_max, use_bf16):
    """Sublane-aligned row tile; keep >= 2 row blocks when M allows (v7x: 2 TCs)."""
    align = 16 if use_bf16 else 8
    if tm_max >= M:
        tm = M                                    # single full block (always legal)
    else:
        tm = max(align, (tm_max // align) * align)
    if tm >= M and M >= 2 * align:
        tm = _round_up(pl.cdiv(M, 2), align)      # split rows so both TCs get work
    return tm


def _pick_col_tile(K, N, w_itemsize, resident_bytes=8 << 20):
    """Keep the whole (K, N) weight resident unless it is too big for VMEM."""
    if K * N * w_itemsize <= resident_bytes or N <= 256:
        return N
    tn = (resident_bytes // (K * w_itemsize)) // 256 * 256
    return int(min(max(tn, 256), N))


def pallas_matmul_bias(x2d, w, b, *, tm=512, use_bf16=True, out_dtype=None):
    """(M, K) @ (K, N) + b with f32 accumulation.

    Grid is (N blocks [outer], M blocks [inner]); for typical ViT dims the N
    axis collapses to a single block so the weight is fetched from HBM once
    and stays resident in VMEM for the whole call.  Ragged edge blocks are
    handled by Pallas' masked boundary stores (no explicit padding).
    """
    M, K = x2d.shape
    K2, N = w.shape
    assert K == K2
    if out_dtype is None:
        out_dtype = jnp.bfloat16 if use_bf16 else jnp.float32
    compute_dtype = jnp.bfloat16 if use_bf16 else jnp.float32

    tm = _pick_row_tile(M, tm, use_bf16)
    tn = _pick_col_tile(K, N, w.dtype.itemsize)
    # N axis OUTER, M axis INNER: weight block index is constant across the
    # inner (row) axis -> fetched once per outer step, not per row tile.
    grid = (pl.cdiv(N, tn), pl.cdiv(M, tm))

    x_b = x2d.dtype.itemsize
    w_b = w.dtype.itemsize
    o_b = jnp.dtype(out_dtype).itemsize
    # double-buffered per-operand tile footprint (conservative)
    vmem_est = 2 * (tm * K * x_b + K * tn * w_b + tn * 4 + tm * tn * o_b)
    cp_kwargs = dict(dimension_semantics=("parallel", "parallel"))
    if vmem_est > (12 << 20):   # beyond v5e's 16 MiB scoped-VMEM default
        cp_kwargs["vmem_limit_bytes"] = int(min(vmem_est + (4 << 20), 96 << 20))

    cost = pl.CostEstimate(
        flops=2 * M * K * N,
        bytes_accessed=M * K * x_b + K * N * w_b + N * 4 + M * N * o_b,
        transcendentals=0)

    return pl.pallas_call(
        partial(_matmul_bias_kernel, compute_dtype=compute_dtype),
        out_shape=jax.ShapeDtypeStruct((M, N), out_dtype),
        grid=grid,
        in_specs=[
            pl.BlockSpec((tm, K), lambda j, i: (i, 0)),
            pl.BlockSpec((K, tn), lambda j, i: (0, j)),   # constant over inner axis
            pl.BlockSpec((1, tn), lambda j, i: (0, j)),
        ],
        out_specs=pl.BlockSpec((tm, tn), lambda j, i: (i, j)),
        compiler_params=pltpu.CompilerParams(**cp_kwargs),
        cost_estimate=cost,
    )(x2d, w, b.reshape(1, N))


# ----------------------------------------------------------------------------
# PatchEmbed
# ----------------------------------------------------------------------------
def init_patch_embed(key, img_size=(224, 224), patch_size=(16, 16),
                     in_chans=3, embed_dim=768, use_bf16=True):
    """Conv2d-style init, stored as a matmul weight (C*P0*P1, D)."""
    P0, P1 = patch_size
    fan_in = in_chans * P0 * P1
    limit = (6.0 / (fan_in + embed_dim)) ** 0.5
    w_conv = jax.random.uniform(key, (embed_dim, in_chans, P0, P1),
                                jnp.float32, -limit, limit)
    # conv weight (D, C, P0, P1) -> matmul weight (C*P0*P1, D); ordering
    # matches the (c, p0, p1) patch-unfold flattening below.
    w_mm = w_conv.reshape(embed_dim, fan_in).T
    params = {
        "w": w_mm.astype(jnp.bfloat16) if use_bf16 else w_mm,
        "b": jnp.zeros((embed_dim,), jnp.float32),
        "w_f32": w_mm,                      # kept only for the reference check
    }
    cfg = dict(img_size=img_size, patch_size=patch_size, in_chans=in_chans,
               embed_dim=embed_dim, use_bf16=use_bf16)
    return params, cfg


def patch_embed_forward(params, x, cfg, *, tm=512):
    """x: (B, C, H, W) -> (B, num_patches, embed_dim). Matches
    Conv2d(kernel=patch, stride=patch).flatten(2).transpose(1, 2)."""
    B, C, H, W = x.shape
    P0, P1 = cfg["patch_size"]
    ph, pw = H // P0, W // P1
    if cfg["use_bf16"]:
        x = x.astype(jnp.bfloat16)          # do the relayout in bf16
    # non-overlapping patch unfold: (B*L, C*P0*P1), flattened (c, p0, p1)
    patches = x.reshape(B, C, ph, P0, pw, P1)
    patches = patches.transpose(0, 2, 4, 1, 3, 5).reshape(B * ph * pw, C * P0 * P1)
    tok = pallas_matmul_bias(patches, params["w"], params["b"],
                             tm=tm, use_bf16=cfg["use_bf16"])
    return tok.reshape(B, ph * pw, cfg["embed_dim"])


# ----------------------------------------------------------------------------
# Main
# ----------------------------------------------------------------------------
if __name__ == "__main__":
    # small shapes consistent with the module
    B = 2
    img_size = (32, 32)
    patch_size = (8, 8)
    in_chans = 3
    embed_dim = 128          # lane-dense output (multiple of 128)

    key = jax.random.PRNGKey(0)
    pkey, xkey = jax.random.split(key)
    x = jax.random.normal(xkey, (B, in_chans) + img_size, jnp.float32)

    ph, pw = img_size[0] // patch_size[0], img_size[1] // patch_size[1]
    K = in_chans * patch_size[0] * patch_size[1]

    # pure-JAX unfold (shared by both reference checks)
    patches_f32 = x.reshape(B, in_chans, ph, patch_size[0], pw, patch_size[1])
    patches_f32 = patches_f32.transpose(0, 2, 4, 1, 3, 5).reshape(B * ph * pw, K)

    # --- production bf16 path -------------------------------------------------
    params, cfg = init_patch_embed(pkey, img_size, patch_size, in_chans,
                                   embed_dim, use_bf16=True)
    fwd = jax.jit(lambda p, inp: patch_embed_forward(p, inp, cfg))
    out = jax.block_until_ready(fwd(params, x))

    assert out.shape == (B, ph * pw, embed_dim), out.shape
    assert out.dtype == jnp.bfloat16, out.dtype

    # reference with bf16-quantized inputs/weights, f32 accumulation
    p_bf = patches_f32.astype(jnp.bfloat16).astype(jnp.float32)
    w_bf = params["w"].astype(jnp.float32)
    ref = (p_bf @ w_bf + params["b"]).reshape(out.shape)
    err_bf = float(jnp.max(jnp.abs(out.astype(jnp.float32) - ref)))
    assert jnp.allclose(out.astype(jnp.float32), ref, rtol=2e-2, atol=2e-2), err_bf

    # --- tighter f32 sanity check (use_bf16=False path) -----------------------
    params32, cfg32 = init_patch_embed(pkey, img_size, patch_size, in_chans,
                                       embed_dim, use_bf16=False)
    fwd32 = jax.jit(lambda p, inp: patch_embed_forward(p, inp, cfg32))
    out32 = jax.block_until_ready(fwd32(params32, x))
    assert out32.dtype == jnp.float32
    ref32 = (patches_f32 @ params32["w_f32"] + params32["b"]).reshape(out32.shape)
    err32 = float(jnp.max(jnp.abs(out32 - ref32)))
    assert jnp.allclose(out32, ref32, rtol=1e-2, atol=1e-2), err32

    print("KERNEL_OK")
</pallas_src>

<mosaic_0001>
module attributes {stable_mosaic.version = 11 : i64} {
  func.func @_matmul_bias_kernel(%arg0: i32, %arg1: i32, %arg2: memref<16x192xbf16, #tpu.memory_space<vmem>>, %arg3: memref<192x128xbf16, #tpu.memory_space<vmem>>, %arg4: memref<1x128xf32, #tpu.memory_space<vmem>>, %arg5: memref<16x128xbf16, #tpu.memory_space<vmem>>) attributes {dimension_semantics = [#tpu.dimension_semantics<parallel>, #tpu.dimension_semantics<parallel>], iteration_bounds = array<i64: 1, 2>, scalar_prefetch = 0 : i64, scratch_operands = 0 : i64, tpu.core_type = #tpu.core_type<tc>, window_params = [{transform_indices = @transform_0, window_bounds = array<i64: 16, 192>}, {transform_indices = @transform_1, window_bounds = array<i64: 192, 128>}, {transform_indices = @transform_2, window_bounds = array<i64: 1, 128>}, {transform_indices = @transform_3, window_bounds = array<i64: 16, 128>}]} {
    %c0 = arith.constant 0 : index
    %c0_0 = arith.constant 0 : index
    %0 = vector.load %arg2[%c0, %c0_0] : memref<16x192xbf16, #tpu.memory_space<vmem>>, vector<16x192xbf16>
    %c0_1 = arith.constant 0 : index
    %c0_2 = arith.constant 0 : index
    %1 = vector.load %arg3[%c0_1, %c0_2] : memref<192x128xbf16, #tpu.memory_space<vmem>>, vector<192x128xbf16>
    %cst = arith.constant dense<0.000000e+00> : vector<16x128xf32>
    %2 = tpu.matmul %0, %1, %cst {dimension_numbers = #tpu.dot_dimension_numbers<[1], [0], [0], [1], [0, 0, 1, 1], [], []>} : vector<16x192xbf16>, vector<192x128xbf16>, vector<16x128xf32> -> vector<16x128xf32>
    %c0_3 = arith.constant 0 : index
    %c0_4 = arith.constant 0 : index
    %3 = vector.load %arg4[%c0_3, %c0_4] : memref<1x128xf32, #tpu.memory_space<vmem>>, vector<1x128xf32>
    %4 = vector.broadcast %3 : vector<1x128xf32> to vector<16x128xf32>
    %5 = arith.addf %2, %4 : vector<16x128xf32>
    %6 = arith.truncf %5 : vector<16x128xf32> to vector<16x128xbf16>
    %c0_5 = arith.constant 0 : index
    %c0_6 = arith.constant 0 : index
    %7 = vector.load %arg5[%c0_5, %c0_6] : memref<16x128xbf16, #tpu.memory_space<vmem>>, vector<16x128xbf16>
    tpu.vector_store %arg5[%c0_5, %c0_6], %6 {strides = array<i32>} : memref<16x128xbf16, #tpu.memory_space<vmem>>, vector<16x128xbf16>,
    return
  }
  func.func @transform_0(%arg0: i32, %arg1: i32) -> (i32, i32) {
    %c0_i32 = arith.constant 0 : i32
    %c0_i32_0 = arith.constant 0 : i32
    return %arg1, %c0_i32 : i32, i32
  }
  func.func @transform_1(%arg0: i32, %arg1: i32) -> (i32, i32) {
    %c0_i32 = arith.constant 0 : i32
    %c0_i32_0 = arith.constant 0 : i32
    return %c0_i32, %arg0 : i32, i32
  }
  func.func @transform_2(%arg0: i32, %arg1: i32) -> (i32, i32) {
    %c0_i32 = arith.constant 0 : i32
    %c0_i32_0 = arith.constant 0 : i32
    return %c0_i32, %arg0 : i32, i32
  }
  func.func @transform_3(%arg0: i32, %arg1: i32) -> (i32, i32) {
    %c0_i32 = arith.constant 0 : i32
    return %arg1, %arg0 : i32, i32
  }
}

</mosaic_0001>

<bundles_post_ra>
// kernel: _lambda_.1
= control target key start
LH: loop header
LB: loop body
LE: loop exit
PB: predicated region body
PF: predicated region fallthrough
CT: control target
= control target key end

     0   :  { %8 = vsyncpa [#allocation3], 0  ;;  %s876_s0 = inlined_call_operand.vmem [shape: bf16[32,192], index: 0, kind: input, shape index: {}]   ;;  %s877_s1 = inlined_call_operand.vmem [shape: bf16[192,128], index: 1, kind: input, shape index: {}]   ;;  %s878_s2 = inlined_call_operand.vmem [shape: f32[1,128], index: 2, kind: input, shape index: {}]   ;;  %s879_s3 = inlined_call_operand.hbm [shape: bf16[32,128], index: 3, kind: output, shape index: {}]  }
   0x1   :  { %10 = vsyncpa [#allocation3 + $0x1], 0  ;;  %s738_s12 = smov 0   ;;  %s740_s13 = smov 0  }
   0x2   :  { %s742_s14 = smov 0   ;;  %s744_s15 = smov 0  }
   0x3   :  { %s746_s16 = smov 0   ;;  %s748_s17 = smov 0  }
   0x4 LB: > { %s484_s18 = sadd.s32 4294967295, %s714_s17   ;;  %s485_s19 = sadd.s32 4294967294, %s714_s17   ;;  %s714_s17 = sphi %s748_s17, %s16_s17   ;;  %s710_s16 = sphi %s746_s16, %s886_s16   ;;  %s706_s15 = sphi %s744_s15, %s885_s15   ;;  %s702_s14 = sphi %s742_s14, %s884_s14   ;;  %s698_s13 = sphi %s740_s13, %s883_s13   ;;  %s694_s12 = sphi %s738_s12, %s882_s12  }
   0x5   : > { %s25_s20 = sadd.s32 1, %s710_s16  ;;  %s115_s21 = sadd.s32 1, %s702_s14 }
   0x6   : > { %p26_p0 = scmp.ge.s32.totalorder %s25_s20, 2  ;;  %p125_p1 = scmp.ne.s32.totalorder %s702_s14, %s698_s13 }
   0x7   : > { %p126_p2 = scmp.eq.s32.totalorder %s484_s18, 1  ;;  %p131_p3 = scmp.ne.s32.totalorder %s698_s13, %s694_s12 }
   0x8   : > { %s888_s20 = smov (%p26_p0, %s25_s20), 0  ;;  %p132_p5 = scmp.eq.s32.totalorder %s485_s19, 1 }
   0x9   : > { %p778_p4 = por %p126_p2, %p125_p1  ;;  %s110_s23 = ssub.s32 %s710_s16, %s888_s20 }
   0xa   : > { %p490_p6 = scmp.ge.s32.totalorder %s714_s17, 1  ;;  %p113_p7 = scmp.eq.s32.totalorder %s110_s23, 0 }
   0xb   : > { %p785_p8 = por %p132_p5, %p131_p3  ;;  %p173_p9 = scmp.lt.s32.totalorder %s714_s17, 3 }
   0xc   : > { %s791_s25 = scalar_select %p113_p7, %s702_s14, %s115_s21  }
   0xd   : > { %p174_p10 = pnand %p490_p6, %p173_p9 }
   0xe   : > { %s492_s28 = sshll.u32 (!%p174_p10), %s706_s15, 1  ;;  %s202_s11 = sand.u32 (!%p174_p10), 1, %s698_s13  }
   0xf   : > { %177 = sbr.rel (%p174_p10) target bundleno = 196 (0xc4), region = 32  ;;  %p206_p11 = scmp.lt.s32.totalorder (!%p174_p10), %s492_s28, 3 }
  0x10   : > { %s491_s21 = sshll.u32 (!%p174_p10), %s202_s11, 3  ;;  %s572_s26 = sshll.u32 (!%p174_p10), %s706_s15, 3 }
  0x11   : > { %s381_s29 = scalar_lea.hbm (!%p174_p10), %s879_s3, %s572_s26  ;;  %s369_s15 = scalar_lea.sflag (!%p174_p10), [#allocation3], %s202_s11 }
  0x12   : > { %s384_s4 = sshll.u32 (!%p174_p10), %s381_s29, 4  ;;  %s656_s9 = scalar_lea.hbm (!%p174_p10), %s879_s3, 16  ;;  %s385_s4 = int_to_ptr.hbm [resolvable:$true] %s384_s4 }
  0x13   : > { %s650_s5 = sshra.s32 (!%p174_p10), %s385_s4, 4  ;;  %s651_s5 = int_to_ptr.hbm [resolvable:$true] %s650_s5 }
  0x14   : > { %v567_v0 = vld [vmem:[%s877_s1 + $0x38] sm:$0xff]  ;;  %v566_v2 = vld [vmem:[%s877_s1 + $0x30] sm:$0xff]  ;;  %s890_s28 = smov (!%p206_p11, %s492_s28), 3  ;;  %v565_v4 = vld [vmem:[%s877_s1 + $0x28] sm:$0xff]  ;;  %vm332_vm0 = vcmask 523264   ;;  %s652_s6 = scalar_lea.hbm %s651_s5, 8 }
  0x15   : > { %v571_v1 = vld [vmem:[%s877_s1 + $0x58] sm:$0xff]  ;;  %336 = vmatpush.bf16.msra.mxu0 %v567_v0  ;;  %v570_v3 = vld [vmem:[%s877_s1 + $0x50] sm:$0xff]  ;;  %s557_s8 = sshll.u32 %s890_s28, 3  ;;  %v569_v5 = vld [vmem:[%s877_s1 + $0x48] sm:$0xff]  ;;  %p653_p12 = scmp.ne.s32.totalorder %s651_s5, %s652_s6 }
  0x16   : > { %354 = vmatpush.bf16.msra.mxu1 %v571_v1  ;;  %s210_s23 = scalar_lea.vmem %s876_s0, %s557_s8  ;;  %v564_v6 = vld [vmem:[%s877_s1 + $0x20] sm:$0xff]  ;;  %v563_v10 = vld [vmem:[%s877_s1 + $0x18] sm:$0xff]  ;;  %v562_v12 = vld [vmem:[%s877_s1 + $0x10] sm:$0xff]  ;;  %p657_p1 = scmp.lt.s32.totalorder %s651_s5, %s879_s3 }
  0x17   : > { %v568_v7 = vld [vmem:[%s877_s1 + $0x40] sm:$0xff]  ;;  %v499_v9 = vld [vmem:[%s210_s23 + $0x8] sm:$0xf0]  ;;  %v559_v16 = vld [vmem:[%s210_s23 + $0x4] sm:$0xf0]  ;;  %p654_p13 = pnand %p653_p12, %p778_p4  ;;  %p658_p2 = scmp.lt.s32.totalorder %s656_s9, %s652_s6 }
  0x18   : > { %v558_v8 = vld [vmem:[%s210_s23 + $0x4] sm:$0xf]  ;;  %v561_v13 = vld [vmem:[%s877_s1 + $0x8] sm:$0xff]  ;;  %v497_v15 = vld [vmem:[%s210_s23] sm:$0xf]  ;;  %s204_s23 = scalar_lea.vmem [#allocation2], %s491_s21 }
  0x19   : > { %337 = vmatpush.bf16.msra.mxu0 %v566_v2  ;;  %v502_v11 = vor.u32 %v558_v8, %v499_v9  ;;  %v560_v14 = vld [vmem:[%s877_s1] sm:$0xff]  ;;  %v498_v17 = vor.u32 %v559_v16, %v497_v15  ;;  %s841_s30 = sshll.u32 %s204_s23, 4  ;;  %p655_p0 = pneg %p654_p13  ;;  %s383_s30 = int_to_ptr.vmem [resolvable:$true] %s841_s30 }
  0x1a   : > { %355 = vmatpush.bf16.msra.mxu1 %v570_v3  ;;  %v635_v20 = vld [vmem:[%s878_s2] ss:$0 sm:$0xff]  ;;  %p659_p3 = por %p658_p2, %p657_p1 }
  0x1c   : > { %p660_p5 = pnand %p659_p3, %p655_p0 }
  0x1d   : > { %338 = vmatpush.bf16.msra.mxu0 %v565_v4 }
  0x1e   : > { %356 = vmatpush.bf16.msra.mxu1 %v569_v5 }
  0x21   : > { %339 = vmatpush.bf16.msra.mxu0 %v564_v6 }
  0x22   : > { %357 = vmatpush.bf16.msra.mxu1 %v568_v7 }
  0x25   : > { %340 = vmatpush.bf16.msra.mxu0 %v563_v10  ;;  %551 = vmatmul.msk.bf16.vlgmr.msra.gmra.mxu1 %vm332_vm0, %v502_v11 }
  0x29   : > { %341 = vmatpush.bf16.msra.mxu0 %v562_v12 }
  0x2d   : > { %342 = vmatpush.bf16.msra.mxu0 %v561_v13 }
  0x31   : > { %343 = vmatpush.bf16.msra.mxu0 %v560_v14 }
  0x34   : > { %344 = vmatmul.bf16.vlgmr.msra.gmra.mxu0 %v498_v17 }
  0xa2   : > { %v359_v18 = vpop.f32.mrf.mxu1 }
  0xaa   : > { %v361_v24 = vpop.f32.mrf.mxu1 }
  0xb1   : > { %v345_v19 = vpop.f32.mrf.mxu0 }
  0xb2   : > { %v346_v21 = vadd.f32 %v635_v20, %v345_v19 }
  0xb4   : > { %v360_v25 = vadd.f32 %v359_v18, %v346_v21 }
  0xb9   : > { %v347_v22 = vpop.f32.mrf.mxu0 }
  0xba   : > { %v348_v23 = vadd.f32 %v635_v20, %v347_v22 }
  0xbc   : > { %v362_v26 = vadd.f32 %v361_v24, %v348_v23 }
  0xbe   : > { %v576_v27 = vpack.c.bf16 %v362_v26, %v360_v25 }
  0xc0   : > { %577 = vst [vmem:[%s204_s23] sm:$0xff] %v576_v27  }
  0xc1   : > { %663 = shalt.err (!%p660_p5)
}
  0xc2   : > { %s716_s11 = smov 64   ;;  %s717_s19 = smov 4  }
  0xc3   : > { %578 = dma.vmem_to_hbm [thread:$0]  (%p778_p4), %s383_s30, 128, %s385_s4, %s369_s15, %s716_s11, %s716_s11, %s717_s19  }
  0xc4 PF: > { %p584_p6 = scmp.ge.s32.totalorder %s714_s17, 2  ;;  %s399_s21 = sand.u32 1, %s694_s12  }
  0xc5   : > { %s400_s26 = scalar_lea.sflag [#allocation3], %s399_s21 }
  0xc6   : > { %p581_p7 = pnand %p584_p6, %p785_p8 }
  0xc8   : > { %p582_p9 = pneg %p581_p7 }
  0xca   : > { %689 = dma.done.wait (%p582_p9), %s400_s26, 128  }
  0xcb   : > { %691 = vsyncadd (%p582_p9), %s400_s26, 4294967168  ;;  %s16_s17 = sadd.s32 1, %s714_s17   ;;  %s882_s12 = smov %s698_s13 }
  0xcc   : > { %p13_p10 = scmp.ge.s32.totalorder %s16_s17, 4   ;;  %s883_s13 = smov %s702_s14 }
  0xcd   : > { %s884_s14 = smov %s791_s25  ;;  %s885_s15 = smov %s710_s16 }
  0xce   : > { %s886_s16 = smov %s888_s20  ;;  %15 = sbr.rel (!%p13_p10) target bundleno = 4 (0x4), region = 73 }
  0xd3   :  { %406 = vsyncpa [#allocation3], 1 }
  0xd4   :  { %408 = vsyncpa [#allocation3 + $0x1], 1 }

</bundles_post_ra>
